<compile_context>
chip_gen: v7x
topology: tpu7x:2x2x1
jax: 0.10.0
libtpu: 0.0.40
codegen_flags: <defaults>
</compile_context>

<pallas_src>
import numpy as np
import jax
import jax.numpy as jnp
from jax.experimental import pallas as pl
from jax.experimental.pallas import tpu as pltpu

# ---------------------------------------------------------------------------
# sizes (small, consistent with the module's __init__)
# ---------------------------------------------------------------------------
B, S = 2, 8          # batch, sequence length of the index tensor x
TIM_SIZE = 48        # param.tim_size   (vocabulary of the time embedding)
TIM_EMB = 16         # param.tim_emb_size


# ---------------------------------------------------------------------------
# Pallas kernel: embedding gather via one-hot @ table on the MXU
# ---------------------------------------------------------------------------
def tim_emb_kernel(idx_ref,      # (N, 1)   int32 indices
                   tab_ref,      # (V, E)   f32 embedding table
                   out_ref):     # (N, E)   f32 gathered rows
    idx = idx_ref[...]                                        # (N, 1)
    n = idx.shape[0]
    vocab = tab_ref.shape[0]
    # one_hot[n, v] = (idx[n] == v), in the table's dtype (bf16-table safe).
    col = jax.lax.broadcasted_iota(jnp.int32, (n, vocab), 1)  # (N, V)
    onehot = (col == idx).astype(tab_ref.dtype)
    # HIGHEST precision -> the one-hot selection reproduces table rows exactly
    # even through the multi-pass bf16 MXU decomposition of an f32 matmul.
    out_ref[...] = jnp.dot(onehot, tab_ref[...],
                           preferred_element_type=jnp.float32,
                           precision=jax.lax.Precision.HIGHEST)


# ---------------------------------------------------------------------------
# wrapper: layout glue + pallas_call
#   Flattens ALL leading dims of x into one call so arbitrarily many lookups
#   against the same table are batched into a single MXU push.
# ---------------------------------------------------------------------------
def tim_diff_emb_pallas(x, emb_tim):
    lead_shape = x.shape
    n = int(np.prod(lead_shape))
    vocab, emb = emb_tim.shape

    # Pad row count to a sublane multiple of 8 (padded rows gather index 0 and
    # are sliced off below).
    n_pad = max(8, ((n + 7) // 8) * 8)
    idx = x.reshape(n).astype(jnp.int32)
    if n_pad != n:
        idx = jnp.pad(idx, (0, n_pad - n))
    idx = idx.reshape(n_pad, 1)

    vmem = pl.BlockSpec(memory_space=pltpu.MemorySpace.VMEM)
    bytes_accessed = (idx.size * 4
                      + emb_tim.size * emb_tim.dtype.itemsize
                      + n_pad * emb * 4)
    cost = pl.CostEstimate(flops=2 * n_pad * vocab * emb,
                           transcendentals=0,
                           bytes_accessed=bytes_accessed)

    out = pl.pallas_call(
        tim_emb_kernel,
        out_shape=jax.ShapeDtypeStruct((n_pad, emb), jnp.float32),
        in_specs=[vmem, vmem],
        out_specs=vmem,
        cost_estimate=cost,
    )(idx, emb_tim)

    return out[:n].reshape(*lead_shape, emb)


# ---------------------------------------------------------------------------
# pure-JAX reference (mirrors the PyTorch forward exactly)
# ---------------------------------------------------------------------------
def reference_forward(x, emb_tim):
    return emb_tim[x]


# ---------------------------------------------------------------------------
if __name__ == "__main__":
    key = jax.random.PRNGKey(0)
    k_tab, k_idx = jax.random.split(key)

    emb_tim = 0.5 * jax.random.normal(k_tab, (TIM_SIZE, TIM_EMB),
                                      dtype=jnp.float32)
    x = jax.random.randint(k_idx, (B, S), 0, TIM_SIZE, dtype=jnp.int32)

    out = tim_diff_emb_pallas(x, emb_tim)
    jax.block_until_ready(out)

    ref = reference_forward(x, emb_tim)
    np.testing.assert_allclose(np.asarray(out), np.asarray(ref),
                               rtol=1e-6, atol=1e-6)
    assert out.shape == (B, S, TIM_EMB)
    print("KERNEL_OK")
</pallas_src>

<mosaic_0001>
module attributes {stable_mosaic.version = 11 : i64} {
  func.func @tim_emb_kernel(%arg0: memref<16x1xi32, #tpu.memory_space<vmem>>, %arg1: memref<48x16xf32, #tpu.memory_space<vmem>>, %arg2: memref<16x16xf32, #tpu.memory_space<vmem>>) attributes {dimension_semantics = [], scalar_prefetch = 0 : i64, scratch_operands = 0 : i64, tpu.core_type = #tpu.core_type<tc>} {
    %c0 = arith.constant 0 : index
    %c0_0 = arith.constant 0 : index
    %0 = vector.load %arg0[%c0, %c0_0] : memref<16x1xi32, #tpu.memory_space<vmem>>, vector<16x1xi32>
    %1 = tpu.iota {dimensions = array<i32: 1>} : vector<16x48xi32>
    %2 = vector.broadcast %0 : vector<16x1xi32> to vector<16x48xi32>
    %3 = arith.cmpi eq, %1, %2 : vector<16x48xi32>
    %4 = arith.extui %3 : vector<16x48xi1> to vector<16x48xi32>
    %5 = arith.sitofp %4 : vector<16x48xi32> to vector<16x48xf32>
    %c0_1 = arith.constant 0 : index
    %c0_2 = arith.constant 0 : index
    %6 = vector.load %arg1[%c0_1, %c0_2] : memref<48x16xf32, #tpu.memory_space<vmem>>, vector<48x16xf32>
    %cst = arith.constant dense<0.000000e+00> : vector<16x16xf32>
    %7 = tpu.matmul %5, %6, %cst {dimension_numbers = #tpu.dot_dimension_numbers<[1], [0], [0], [1], [0, 0, 1, 1], [], []>, precision = #tpu.contract_precision<fp32>} : vector<16x48xf32>, vector<48x16xf32>, vector<16x16xf32> -> vector<16x16xf32>
    %c0_3 = arith.constant 0 : index
    %c0_4 = arith.constant 0 : index
    %8 = vector.load %arg2[%c0_3, %c0_4] : memref<16x16xf32, #tpu.memory_space<vmem>>, vector<16x16xf32>
    tpu.vector_store %arg2[%c0_3, %c0_4], %7 {strides = array<i32>} : memref<16x16xf32, #tpu.memory_space<vmem>>, vector<16x16xf32>,
    return
  }
}

</mosaic_0001>

<bundles_post_ra>
// kernel: tpu_custom_call.1
= control target key start
LH: loop header
LB: loop body
LE: loop exit
PB: predicated region body
PF: predicated region fallthrough
CT: control target
= control target key end

     0   :  { %v872_v2 = vmov 0   ;;  %s960_s0 = inlined_call_operand.vmem [shape: s32[16,1], index: 0, kind: input, shape index: {}]   ;;  %s961_s1 = inlined_call_operand.vmem [shape: f32[48,16], index: 1, kind: input, shape index: {}]   ;;  %s962_s2 = inlined_call_operand.hbm [shape: f32[16,16], index: 2, kind: output, shape index: {}]  }
   0x1   :  { %v12_v0 = vld [vmem:[%s960_s0] sm:$0xff]  ;;  %847 = vset.pattern.permute.xlu0 %v872_v2  ;;  %v29_v3 = vld [vmem:[%s961_s1 + $0x8] sm:$0xff]  ;;  %v30_v5 = vld [vmem:[%s961_s1 + $0x10] sm:$0xff] }
   0x2   :  { %v28_v1 = vld [vmem:[%s961_s1] sm:$0xff]  ;;  %v31_v6 = vld [vmem:[%s961_s1 + $0x18] sm:$0xff]  ;;  %17 = vperm.xlu0 %847, %v12_v0   ;;  %v45_v7 = vand.u32 4294901760, %v29_v3  ;;  %v48_v8 = vand.u32 4294901760, %v30_v5 }
   0x3   :  { %v42_v4 = vand.u32 4294901760, %v28_v1  ;;  %v51_v9 = vand.u32 4294901760, %v31_v6 }
   0x4   :  { %7 = vsyncpa [#allocation3], 0  ;;  %v13_v10 = vld [vmem:[%s960_s0 + $0x8] sm:$0xff]  ;;  %v32_v11 = vld [vmem:[%s961_s1 + $0x20] sm:$0xff]  ;;  %v141_v18 = vsub.f32 %v29_v3, %v45_v7  ;;  %v148_v24 = vsub.f32 %v30_v5, %v48_v8  ;;  %v14_v51 = vlaneseq  ;;  %vm34_vm0 = vcmask 392192   ;;  %s874_s0 = smov [#allocation2]  }
   0x5   :  { %v33_v12 = vld [vmem:[%s961_s1 + $0x28] sm:$0xff]  ;;  %v916_v13 = vpack.c.bf16 %v45_v7, %v42_v4  ;;  %v918_v14 = vpack.c.bf16 %v51_v9, %v48_v8  ;;  %v54_v15 = vand.u32 4294901760, %v32_v11  ;;  %v134_v17 = vsub.f32 %v28_v1, %v42_v4  ;;  %s603_s1 = sshll.u32 %s874_s0, 4  ;;  %s604_s1 = int_to_ptr.vmem [resolvable:$true] %s603_s1 }
   0x6   :  { %v57_v16 = vand.u32 4294901760, %v33_v12  ;;  %20 = vperm.xlu0 %847, %v13_v10   ;;  %v142_v21 = vand.u32 4294901760, %v141_v18  ;;  %v155_v25 = vsub.f32 %v31_v6, %v51_v9  ;;  %v149_v29 = vand.u32 4294901760, %v148_v24  ;;  %s848_s25 = scalar_lea.vmem %s604_s1, 256  ;;  %p853_p1 = scmp.lt.s32.totalorder %s604_s1, %s604_s1 }
   0x7   :  { %797 = vmatprep.subr.bf16.mxu0 %v916_v13  ;;  %761 = vmatprep.subr.bf16.mxu1 %v916_v13  ;;  %v135_v20 = vand.u32 4294901760, %v134_v17  ;;  %v162_v35 = vsub.f32 %v32_v11, %v54_v15  ;;  %v784_v48 = vpack.c.bf16 %v141_v18, %v134_v17  ;;  %v15_v52 = vand.u32 127, %v14_v51  ;;  %p849_p0 = scmp.ne.s32.totalorder %s604_s1, %s848_s25  ;;  %p854_p2 = scmp.lt.s32.totalorder %s848_s25, %s848_s25 }
   0x8   :  { %799 = vmatpush3.bf16.msra.mxu0 %v916_v13  ;;  %763 = vmatpush3.bf16.msra.mxu1 %v916_v13  ;;  %v925_v19 = vpack.c.bf16 %v57_v16, %v54_v15  ;;  %v143_v23 = vsub.f32 %v141_v18, %v142_v21  ;;  %v156_v30 = vand.u32 4294901760, %v155_v25  ;;  %v150_v33 = vsub.f32 %v148_v24, %v149_v29 }
   0x9   :  { %801 = vmatprep.subr.bf16.mxu0 %v918_v14  ;;  %765 = vmatprep.subr.bf16.mxu1 %v918_v14  ;;  %v136_v22 = vsub.f32 %v134_v17, %v135_v20  ;;  %v808_v26 = vpack.c.bf16 %v142_v21, %v135_v20  ;;  %v169_v36 = vsub.f32 %v33_v12, %v57_v16  ;;  %v163_v39 = vand.u32 4294901760, %v162_v35  ;;  %p855_p3 = por %p854_p2, %p853_p1 }
   0xa   :  { %v144_v28 = vand.u32 4294901760, %v143_v23  ;;  %v812_v32 = vpack.c.bf16 %v156_v30, %v149_v29  ;;  %v157_v34 = vsub.f32 %v155_v25, %v156_v30  ;;  %v151_v37 = vand.u32 4294901760, %v150_v33 }
   0xb   :  { %v137_v27 = vand.u32 4294901760, %v136_v22  ;;  %v170_v40 = vand.u32 4294901760, %v169_v36  ;;  %v164_v43 = vsub.f32 %v162_v35, %v163_v39  ;;  %v788_v49 = vpack.c.bf16 %v155_v25, %v148_v24  ;;  %p856_p4 = pnand %p855_p3, %p849_p0 }
   0xc   :  { %803 = vmatpush3.bf16.msra.mxu0 %v918_v14  ;;  %767 = vmatpush3.bf16.msra.mxu1 %v918_v14  ;;  %v158_v38 = vand.u32 4294901760, %v157_v34  ;;  %v792_v50 = vpack.c.bf16 %v169_v36, %v162_v35  ;;  %v873_v54 = vmov 0.0   ;;  %vm595_vm3 = vcmask 130048  }
   0xd   :  { %805 = vmatprep.subr.bf16.mxu0 %v925_v19  ;;  %769 = vmatprep.subr.bf16.mxu1 %v925_v19  ;;  %v772_v31 = vpack.c.bf16 %v144_v28, %v137_v27  ;;  %v816_v42 = vpack.c.bf16 %v170_v40, %v163_v39  ;;  %v171_v44 = vsub.f32 %v169_v36, %v170_v40  ;;  %v165_v45 = vand.u32 4294901760, %v164_v43 }
   0xe   :  { %v776_v41 = vpack.c.bf16 %v158_v38, %v151_v37 }
   0xf   :  { %v172_v46 = vand.u32 4294901760, %v171_v44 }
  0x10   :  { %807 = vmatpush3.bf16.msra.mxu0 %v925_v19  ;;  %771 = vmatpush3.bf16.msra.mxu1 %v925_v19 }
  0x11   :  { %809 = vmatprep.subr.bf16.mxu0 %v808_v26  ;;  %773 = vmatprep.subr.bf16.mxu1 %v772_v31  ;;  %v780_v47 = vpack.c.bf16 %v172_v46, %v165_v45 }
  0x81   :  { %v18_v53 = vpop.permute.xlu0 %17 }
  0x82   :  { %vm22_vm1 = vcmp.eq.s32.totalorder %v15_v52, %v18_v53 }
  0x83   :  { %v614_v55 = vsel %vm22_vm1, 1.0, %v873_v54 }
  0x84   :  { %v36_v56 = vsel %vm34_vm0, %v614_v55, 0 }
  0x85   :  { %v113_v57 = vsub.f32 %v36_v56, %v36_v56  ;;  %v21_v58 = vpop.permute.xlu0 %20 }
  0x86   :  { %vm23_vm2 = vcmp.eq.s32.totalorder %v15_v52, %v21_v58 }
  0x87   :  { %v615_v59 = vsel %vm23_vm2, 1.0, %v873_v54  ;;  %v114_v60 = vand.u32 4294901760, %v113_v57 }
  0x88   :  { %v39_v61 = vsel %vm34_vm0, %v615_v59, 0 }
  0x89   :  { %v123_v62 = vsub.f32 %v39_v61, %v39_v61  ;;  %727 = vmatprep.mubr.f32.mxu0 %v114_v60  ;;  %v115_v63 = vsub.f32 %v113_v57, %v114_v60 }
  0x8b   :  { %v116_v0 = vand.u32 4294901760, %v115_v63  ;;  %v124_v1 = vand.u32 4294901760, %v123_v62 }
  0x8d   :  { %682 = vmatprep.mubr.f32.mxu1 %v116_v0  ;;  %728 = vmatmul.mubr.f32.vlgmr.msra.gmra.mrb[0].mxu0 %v124_v1  ;;  %v125_v2 = vsub.f32 %v123_v62, %v124_v1 }
  0x8e   :  { %811 = vmatpush3.bf16.msra.mxu0 %v808_v26  ;;  %742 = vmatprep.mubr.msk.f32.mxu0 %vm34_vm0, %v614_v55 }
  0x8f   :  { %813 = vmatprep.subr.bf16.mxu0 %v812_v32  ;;  %v126_v3 = vand.u32 4294901760, %v125_v2 }
  0x91   :  { %683 = vmatmul.mubr.f32.vlgmr.msra.gmra.mrb[0].mxu1 %v126_v3 }
  0x92   :  { %775 = vmatpush3.bf16.msra.mxu1 %v772_v31  ;;  %815 = vmatpush3.bf16.msra.mxu0 %v812_v32 }
  0x93   :  { %697 = vmatprep.mubr.msk.f32.mxu1 %vm34_vm0, %v614_v55  ;;  %777 = vmatprep.subr.bf16.mxu1 %v776_v41 }
  0x94   :  { %817 = vmatprep.subr.bf16.mxu0 %v816_v42 }
  0x96   :  { %779 = vmatpush3.bf16.msra.mxu1 %v776_v41  ;;  %819 = vmatpush3.bf16.msra.mxu0 %v816_v42 }
  0x97   :  { %781 = vmatprep.subr.bf16.mxu1 %v780_v47  ;;  %821 = vmatprep.subr.bf16.mxu0 %v916_v13 }
  0x99   :  { %743 = vmatmul.mubr.msk.f32.vlgmr.msra.gmra.mrb[0].mxu0 %vm34_vm0, %v615_v59 }
  0x9a   :  { %783 = vmatpush3.bf16.msra.mxu1 %v780_v47  ;;  %823 = vmatpush3.bf16.msra.mxu0 %v916_v13 }
  0x9b   :  { %757 = vmatprep.mubr.msk.f32.mxu0 %vm34_vm0, %v614_v55  ;;  %785 = vmatprep.subr.bf16.mxu1 %v784_v48 }
  0x9c   :  { %825 = vmatprep.subr.bf16.mxu0 %v918_v14 }
  0x9d   :  { %698 = vmatmul.mubr.msk.f32.vlgmr.msra.gmra.mrb[0].mxu1 %vm34_vm0, %v615_v59 }
  0x9e   :  { %787 = vmatpush3.bf16.msra.mxu1 %v784_v48  ;;  %712 = vmatprep.mubr.f32.mxu1 %v113_v57 }
  0x9f   :  { %827 = vmatpush3.bf16.msra.mxu0 %v918_v14  ;;  %789 = vmatprep.subr.bf16.mxu1 %v788_v49 }
  0xa0   :  { %829 = vmatprep.subr.bf16.mxu0 %v925_v19 }
  0xa2   :  { %791 = vmatpush3.bf16.msra.mxu1 %v788_v49 }
  0xa3   :  { %831 = vmatpush3.bf16.msra.mxu0 %v925_v19  ;;  %793 = vmatprep.subr.bf16.mxu1 %v792_v50 }
  0xa6   :  { %758 = vmatmul.mubr.msk.f32.vlgmr.msra.gmra.mrb[0].mxu0 %vm34_vm0, %v615_v59  ;;  %795 = vmatpush3.bf16.msra.mxu1 %v792_v50 }
  0xa9   :  { %713 = vmatmul.mubr.f32.vlgmr.msra.gmra.mrb[0].mxu1 %v123_v62 }
 0x179   :  { %v759_v4 = vpop.f32.mrb[0].mxu0 }
 0x17a   :  { %v585_v5 = vpop.f32.mrb[1].mxu0 }
 0x17c   :  { %v714_v6 = vpop.f32.mrb[0].mxu1 }
 0x17d   :  { %v832_v7 = vadd.f32 %v759_v4, %v714_v6  ;;  %v319_v8 = vpop.f32.mrb[1].mxu1 }
 0x17e   :  { %v833_v9 = vadd.f32 %v585_v5, %v319_v8 }
 0x17f   :  { %597 = vst.msk [vmem:[#allocation2 + $0x8] sm:$0xff] %vm595_vm3, %v832_v7 }
 0x180   :  { %596 = vst.msk [vmem:[#allocation2] sm:$0xff] %vm595_vm3, %v833_v9 }
 0x181   :  { %859 = shalt.err (!%p856_p4)
}
 0x182   :  { %s860_s28 = scalar_lea.hbm %s962_s2, 256 }
 0x183   :  { %p861_p5 = scmp.ne.s32.totalorder %s962_s2, %s860_s28  ;;  %p864_p6 = scmp.lt.u32.totalorder %s860_s28, %s962_s2 }
 0x185   :  { %p866_p7 = pnand %p864_p6, %p861_p5 }
 0x187   :  { %869 = shalt.err (!%p866_p7)
}
 0x188   :  { %s875_s5 = smov 128   ;;  %s876_s6 = smov 8  }
 0x189   :  { %609 = dma.vmem_to_hbm [thread:$0]  %s604_s1, 256, %s962_s2, [#allocation3], %s875_s5, %s875_s5, %s876_s6  }
 0x18a   :  { %870 = dma.done.wait [#allocation3], 256  }
 0x18b   :  { %871 = vsyncadd [#allocation3], 4294967040 }
 0x18c   :  { %613 = vsyncpa [#allocation3], 1 }

</bundles_post_ra>
